<compile_context>
chip_gen: v7x
topology: tpu7x:2x2x1
jax: 0.10.0
libtpu: 0.0.40
codegen_flags: <defaults>
</compile_context>

<pallas_src>
import jax
import jax.numpy as jnp
from jax import lax
from jax.experimental import pallas as pl
from jax.experimental.pallas import tpu as pltpu

_LANES = 128  # lane width of the packed parameter / output slabs (one vreg lane tile)


# --------------------------------------------------------------------------- #
# Kernel
# --------------------------------------------------------------------------- #
def _make_kernel(g, n, fin, h_feats, n_cls, outw):
    """Build the fused 2-layer GCN kernel for G graphs of N nodes per grid step."""
    gn = g * n

    def conv(a_norm, feat_gnf, w, b, f_in, f_out):
        """GraphConv(norm='both') + bias + ReLU, reassociated by min(f_in, f_out)."""
        if f_in <= f_out:
            # aggregate first:  (Anorm @ X) @ W   -- N x N matmul at width f_in
            agg = jnp.einsum("gij,gjf->gif", a_norm, feat_gnf,
                             preferred_element_type=jnp.float32)
            out = jnp.dot(agg.reshape(gn, f_in), w,              # (G*N, f_out), 128 rows
                          preferred_element_type=jnp.float32)
        else:
            # transform first:  Anorm @ (X @ W)   -- N x N matmul at width f_out
            xw = jnp.dot(feat_gnf.reshape(gn, f_in), w,          # (G*N, f_out), 128 rows
                         preferred_element_type=jnp.float32)
            out = jnp.einsum("gij,gjf->gif", a_norm, xw.reshape(g, n, f_out),
                             preferred_element_type=jnp.float32).reshape(gn, f_out)
        return jnp.maximum(out + b, 0.0)                          # f32 epilogue

    def kernel(adj_ref, x_ref, p_ref, out_ref):
        # -- unpack the single lane-padded parameter slab (one DMA) ----------
        w1 = p_ref[0:fin, 0:h_feats]                               # (Fin, H)
        w2 = p_ref[fin:fin + h_feats, 0:n_cls]                     # (H,  C)
        b1 = p_ref[fin + h_feats:fin + h_feats + 1, 0:h_feats]     # (1,  H)
        b2 = p_ref[fin + h_feats + 1:fin + h_feats + 2, 0:n_cls]   # (1,  C)

        # -- adjacency normalization entirely in VMEM (never hits HBM) -------
        adj = adj_ref[...]                                         # (G, N, N) f32 0/1
        in_deg = jnp.maximum(jnp.sum(adj, axis=2, keepdims=True), 1.0)   # (G, N, 1)
        out_deg = jnp.maximum(jnp.sum(adj, axis=1, keepdims=True), 1.0)  # (G, 1, N)
        a_norm = lax.rsqrt(in_deg) * adj * lax.rsqrt(out_deg)      # (G, N, N)

        # -- layer 1 / layer 2 (h1 stays resident, no HBM round-trip) --------
        h1 = conv(a_norm, x_ref[...], w1, b1, fin, h_feats)        # (G*N, H)
        h2 = conv(a_norm, h1.reshape(g, n, h_feats), w2, b2, h_feats, n_cls)  # (G*N, C)

        # -- single lane-dense output slab -> one unmasked full-width store --
        pad = jnp.zeros((gn, outw - h_feats - n_cls), jnp.float32)
        out_ref[...] = jnp.concatenate([h1, h2, pad], axis=-1).reshape(g, n, outw)

    return kernel


# --------------------------------------------------------------------------- #
# Wrappers
# --------------------------------------------------------------------------- #
def _pack_params(params):
    """Pack w1/w2/b1/b2 into one lane-padded f32 slab (single dense DMA)."""
    fin, h = params["w1"].shape
    h2_, c = params["w2"].shape
    assert h2_ == h and max(fin, h, c) <= _LANES
    rows = fin + h + 2
    rows_p = ((rows + 7) // 8) * 8
    slab = jnp.zeros((rows_p, _LANES), jnp.float32)
    slab = slab.at[0:fin, 0:h].set(params["w1"].astype(jnp.float32))
    slab = slab.at[fin:fin + h, 0:c].set(params["w2"].astype(jnp.float32))
    slab = slab.at[fin + h, 0:h].set(params["b1"].astype(jnp.float32))
    slab = slab.at[fin + h + 1, 0:c].set(params["b2"].astype(jnp.float32))
    return slab


def gnn_forward_batched(adjs, feats, params, graphs_per_step=8):
    """Fused 2-layer GCN over a batch of graphs.

    adjs:  (B, N, N) dense 0/1 adjacency, feats: (B, N, Fin).
    Returns (h1, h2) of shapes (B, N, H) and (B, N, C).
    """
    b, n, _ = adjs.shape
    fin, h_feats = params["w1"].shape
    n_cls = params["w2"].shape[1]
    slab = _pack_params(params)
    rows_p = slab.shape[0]

    g = min(graphs_per_step, b)
    pad_b = (-b) % g
    if pad_b:  # pad with empty graphs so B is a multiple of G; sliced off below
        adjs = jnp.concatenate([adjs, jnp.zeros((pad_b, n, n), adjs.dtype)], 0)
        feats = jnp.concatenate([feats, jnp.zeros((pad_b, n, fin), feats.dtype)], 0)
    bp = b + pad_b

    kernel = _make_kernel(g, n, fin, h_feats, n_cls, _LANES)
    out = pl.pallas_call(
        kernel,
        out_shape=jax.ShapeDtypeStruct((bp, n, _LANES), jnp.float32),
        grid=(bp // g,),
        in_specs=[
            pl.BlockSpec((g, n, n), lambda i: (i, 0, 0)),        # adjacency tiles
            pl.BlockSpec((g, n, fin), lambda i: (i, 0, 0)),      # features
            pl.BlockSpec((rows_p, _LANES), lambda i: (0, 0)),    # packed params (reused)
        ],
        out_specs=pl.BlockSpec((g, n, _LANES), lambda i: (i, 0, 0)),
        compiler_params=pltpu.CompilerParams(
            dimension_semantics=("parallel",)),                  # batch axis -> 2 TCs on v7x
    )(adjs.astype(jnp.float32), feats.astype(jnp.float32), slab)

    h1 = out[:b, :, :h_feats]
    h2 = out[:b, :, h_feats:h_feats + n_cls]
    return h1, h2


def gnn_forward(adj, in_feat, params):
    """Single-graph forward matching GNN.forward (with its trailing .squeeze())."""
    h1, h2 = gnn_forward_batched(adj[None], in_feat[None], params, graphs_per_step=1)
    return jnp.squeeze(h1, axis=0).squeeze(), jnp.squeeze(h2, axis=0).squeeze()


# --------------------------------------------------------------------------- #
# Reference & init
# --------------------------------------------------------------------------- #
def gnn_reference_single(adj, x, params):
    """Plain-JAX f32 reference (same math as DGL GraphConv norm='both')."""
    in_deg = jnp.maximum(adj.sum(axis=1), 1.0)
    out_deg = jnp.maximum(adj.sum(axis=0), 1.0)
    a_norm = (in_deg[:, None] ** -0.5) * adj * (out_deg[None, :] ** -0.5)
    h1 = jnp.maximum(a_norm @ x @ params["w1"] + params["b1"], 0.0)
    h2 = jnp.maximum(a_norm @ h1 @ params["w2"] + params["b2"], 0.0)
    return h1, h2


def init_params(key, in_feats, h_feats, num_classes):
    """Deterministic Xavier-uniform-like init (matches DGL GraphConv shapes)."""
    k1, k2 = jax.random.split(key)

    def xavier(k, fan_in, fan_out):
        bound = (6.0 / (fan_in + fan_out)) ** 0.5
        return jax.random.uniform(k, (fan_in, fan_out), jnp.float32,
                                  minval=-bound, maxval=bound)

    return {
        "w1": xavier(k1, in_feats, h_feats),
        "b1": jnp.zeros((h_feats,), jnp.float32),
        "w2": xavier(k2, h_feats, num_classes),
        "b2": jnp.zeros((num_classes,), jnp.float32),
    }


# --------------------------------------------------------------------------- #
# Demo / self-test
# --------------------------------------------------------------------------- #
if __name__ == "__main__":
    B, N, IN_FEATS, H_FEATS, NUM_CLASSES = 16, 16, 8, 32, 4

    key = jax.random.PRNGKey(0)
    k_adj, k_feat, k_par = jax.random.split(key, 3)

    # Batch of small deterministic random directed graphs (~25% edge density).
    adjs = (jax.random.uniform(k_adj, (B, N, N)) < 0.25).astype(jnp.float32)
    feats = jax.random.normal(k_feat, (B, N, IN_FEATS), jnp.float32)
    params = init_params(k_par, IN_FEATS, H_FEATS, NUM_CLASSES)

    # Batched fused kernel (8 graphs per grid step -> 128-row MXU matmuls).
    h1, h2 = gnn_forward_batched(adjs, feats, params, graphs_per_step=8)
    jax.block_until_ready((h1, h2))

    assert h1.shape == (B, N, H_FEATS) and h2.shape == (B, N, NUM_CLASSES)
    assert bool(jnp.all(h1 >= 0)) and bool(jnp.all(h2 >= 0))

    # Numerical check against the f32 reference (all-f32 kernel -> tight tol).
    r1, r2 = jax.vmap(lambda a, x: gnn_reference_single(a, x, params))(adjs, feats)
    assert bool(jnp.allclose(h1, r1, atol=2e-2, rtol=2e-2))
    assert bool(jnp.allclose(h2, r2, atol=2e-2, rtol=2e-2))

    # Single-graph path for parity with the module's forward signature.
    s1, s2 = gnn_forward(adjs[0], feats[0], params)
    jax.block_until_ready((s1, s2))
    assert bool(jnp.allclose(s1, r1[0], atol=2e-2, rtol=2e-2))
    assert bool(jnp.allclose(s2, r2[0], atol=2e-2, rtol=2e-2))

    print("KERNEL_OK")
</pallas_src>

<mosaic_0001>
module attributes {stable_mosaic.version = 11 : i64} {
  func.func @kernel(%arg0: i32, %arg1: memref<8x16x16xf32, #tpu.memory_space<vmem>>, %arg2: memref<8x16x8xf32, #tpu.memory_space<vmem>>, %arg3: memref<48x128xf32, #tpu.memory_space<vmem>>, %arg4: memref<8x16x128xf32, #tpu.memory_space<vmem>>) attributes {dimension_semantics = [#tpu.dimension_semantics<parallel>], iteration_bounds = array<i64: 2>, scalar_prefetch = 0 : i64, scratch_operands = 0 : i64, tpu.core_type = #tpu.core_type<tc>, window_params = [{transform_indices = @transform_0, window_bounds = array<i64: 8, 16, 16>}, {transform_indices = @transform_1, window_bounds = array<i64: 8, 16, 8>}, {pipeline_mode = #tpu.pipeline_mode<synchronous>, transform_indices = @transform_2, window_bounds = array<i64: 48, 128>}, {transform_indices = @transform_3, window_bounds = array<i64: 8, 16, 128>}]} {
    %c0 = arith.constant 0 : index
    %c0_0 = arith.constant 0 : index
    %0 = vector.load %arg3[%c0, %c0_0] : memref<48x128xf32, #tpu.memory_space<vmem>>, vector<8x32xf32>
    %c8 = arith.constant 8 : index
    %c0_1 = arith.constant 0 : index
    %1 = vector.load %arg3[%c8, %c0_1] : memref<48x128xf32, #tpu.memory_space<vmem>>, vector<32x4xf32>
    %c40 = arith.constant 40 : index
    %c0_2 = arith.constant 0 : index
    %2 = vector.load %arg3[%c40, %c0_2] : memref<48x128xf32, #tpu.memory_space<vmem>>, vector<1x32xf32>
    %c41 = arith.constant 41 : index
    %c0_3 = arith.constant 0 : index
    %3 = vector.load %arg3[%c41, %c0_3] : memref<48x128xf32, #tpu.memory_space<vmem>>, vector<1x4xf32>
    %c0_4 = arith.constant 0 : index
    %c0_5 = arith.constant 0 : index
    %c0_6 = arith.constant 0 : index
    %4 = vector.load %arg1[%c0_4, %c0_5, %c0_6] : memref<8x16x16xf32, #tpu.memory_space<vmem>>, vector<8x16x16xf32>
    %cst = arith.constant dense<0.000000e+00> : vector<8x16xf32>
    %5 = vector.multi_reduction <add>, %4, %cst [2] : vector<8x16x16xf32> to vector<8x16xf32>
    %6 = vector.shape_cast %5 : vector<8x16xf32> to vector<8x16x1xf32>
    %cst_7 = arith.constant 1.000000e+00 : f32
    %7 = vector.broadcast %cst_7 : f32 to vector<8x16x1xf32>
    %8 = arith.maximumf %6, %7 : vector<8x16x1xf32>
    %cst_8 = arith.constant dense<0.000000e+00> : vector<8x16xf32>
    %9 = vector.multi_reduction <add>, %4, %cst_8 [1] : vector<8x16x16xf32> to vector<8x16xf32>
    %10 = vector.shape_cast %9 : vector<8x16xf32> to vector<8x1x16xf32>
    %cst_9 = arith.constant 1.000000e+00 : f32
    %11 = vector.broadcast %cst_9 : f32 to vector<8x1x16xf32>
    %12 = arith.maximumf %10, %11 : vector<8x1x16xf32>
    %13 = math.rsqrt %8 : vector<8x16x1xf32>
    %14 = vector.broadcast %13 : vector<8x16x1xf32> to vector<8x16x16xf32>
    %15 = arith.mulf %14, %4 : vector<8x16x16xf32>
    %16 = math.rsqrt %12 : vector<8x1x16xf32>
    %17 = vector.broadcast %16 : vector<8x1x16xf32> to vector<8x16x16xf32>
    %18 = arith.mulf %15, %17 : vector<8x16x16xf32>
    %c0_10 = arith.constant 0 : index
    %c0_11 = arith.constant 0 : index
    %c0_12 = arith.constant 0 : index
    %19 = vector.load %arg2[%c0_10, %c0_11, %c0_12] : memref<8x16x8xf32, #tpu.memory_space<vmem>>, vector<8x16x8xf32>
    "tpu.trace_start"() <{level = 10 : i32, message = "gij,gjf->gif"}> : () -> ()
    %cst_13 = arith.constant dense<0.000000e+00> : vector<8x16x8xf32>
    %20 = tpu.matmul %18, %19, %cst_13 {dimension_numbers = #tpu.dot_dimension_numbers<[2], [1], [1], [2], [0, 0, 0, 1, 1, 2], [0], [0]>} : vector<8x16x16xf32>, vector<8x16x8xf32>, vector<8x16x8xf32> -> vector<8x16x8xf32>
    "tpu.trace_stop"() : () -> ()
    %21 = vector.shape_cast %20 : vector<8x16x8xf32> to vector<128x8xf32>
    %cst_14 = arith.constant dense<0.000000e+00> : vector<128x32xf32>
    %22 = tpu.matmul %21, %0, %cst_14 {dimension_numbers = #tpu.dot_dimension_numbers<[1], [0], [0], [1], [0, 0, 1, 1], [], []>} : vector<128x8xf32>, vector<8x32xf32>, vector<128x32xf32> -> vector<128x32xf32>
    %23 = vector.broadcast %2 : vector<1x32xf32> to vector<128x32xf32>
    %24 = arith.addf %22, %23 : vector<128x32xf32>
    %cst_15 = arith.constant 0.000000e+00 : f32
    %25 = vector.broadcast %cst_15 : f32 to vector<128x32xf32>
    %26 = arith.maximumf %24, %25 : vector<128x32xf32>
    %27 = vector.shape_cast %26 : vector<128x32xf32> to vector<8x16x32xf32>
    %28 = vector.shape_cast %27 : vector<8x16x32xf32> to vector<128x32xf32>
    %cst_16 = arith.constant dense<0.000000e+00> : vector<128x4xf32>
    %29 = tpu.matmul %28, %1, %cst_16 {dimension_numbers = #tpu.dot_dimension_numbers<[1], [0], [0], [1], [0, 0, 1, 1], [], []>} : vector<128x32xf32>, vector<32x4xf32>, vector<128x4xf32> -> vector<128x4xf32>
    %30 = vector.shape_cast %29 : vector<128x4xf32> to vector<8x16x4xf32>
    "tpu.trace_start"() <{level = 10 : i32, message = "gij,gjf->gif"}> : () -> ()
    %cst_17 = arith.constant dense<0.000000e+00> : vector<8x16x4xf32>
    %31 = tpu.matmul %18, %30, %cst_17 {dimension_numbers = #tpu.dot_dimension_numbers<[2], [1], [1], [2], [0, 0, 0, 1, 1, 2], [0], [0]>} : vector<8x16x16xf32>, vector<8x16x4xf32>, vector<8x16x4xf32> -> vector<8x16x4xf32>
    "tpu.trace_stop"() : () -> ()
    %32 = vector.shape_cast %31 : vector<8x16x4xf32> to vector<128x4xf32>
    %33 = vector.broadcast %3 : vector<1x4xf32> to vector<128x4xf32>
    %34 = arith.addf %32, %33 : vector<128x4xf32>
    %cst_18 = arith.constant 0.000000e+00 : f32
    %35 = vector.broadcast %cst_18 : f32 to vector<128x4xf32>
    %36 = arith.maximumf %34, %35 : vector<128x4xf32>
    %cst_19 = arith.constant 0.000000e+00 : f32
    %37 = vector.broadcast %cst_19 : f32 to vector<128x92xf32>
    %38 = tpu.concatenate %26, %36, %37 in 1 : vector<128x32xf32>, vector<128x4xf32>, vector<128x92xf32> -> vector<128x128xf32>
    %39 = vector.shape_cast %38 : vector<128x128xf32> to vector<8x16x128xf32>
    %c0_20 = arith.constant 0 : index
    %c0_21 = arith.constant 0 : index
    %c0_22 = arith.constant 0 : index
    %40 = vector.load %arg4[%c0_20, %c0_21, %c0_22] : memref<8x16x128xf32, #tpu.memory_space<vmem>>, vector<8x16x128xf32>
    tpu.vector_store %arg4[%c0_20, %c0_21, %c0_22], %39 {strides = array<i32>} : memref<8x16x128xf32, #tpu.memory_space<vmem>>, vector<8x16x128xf32>,
    return
  }
  func.func @transform_0(%arg0: i32) -> (i32, i32, i32) {
    %c0_i32 = arith.constant 0 : i32
    %c0_i32_0 = arith.constant 0 : i32
    %c0_i32_1 = arith.constant 0 : i32
    return %arg0, %c0_i32, %c0_i32_0 : i32, i32, i32
  }
  func.func @transform_1(%arg0: i32) -> (i32, i32, i32) {
    %c0_i32 = arith.constant 0 : i32
    %c0_i32_0 = arith.constant 0 : i32
    %c0_i32_1 = arith.constant 0 : i32
    return %arg0, %c0_i32, %c0_i32_0 : i32, i32, i32
  }
  func.func @transform_2(%arg0: i32) -> (i32, i32) {
    %c0_i32 = arith.constant 0 : i32
    %c0_i32_0 = arith.constant 0 : i32
    %c0_i32_1 = arith.constant 0 : i32
    return %c0_i32, %c0_i32_0 : i32, i32
  }
  func.func @transform_3(%arg0: i32) -> (i32, i32, i32) {
    %c0_i32 = arith.constant 0 : i32
    %c0_i32_0 = arith.constant 0 : i32
    %c0_i32_1 = arith.constant 0 : i32
    return %arg0, %c0_i32, %c0_i32_0 : i32, i32, i32
  }
}

</mosaic_0001>

<bundles_post_ra>
// kernel: tpu_custom_call.1
= control target key start
LH: loop header
LB: loop body
LE: loop exit
PB: predicated region body
PF: predicated region fallthrough
CT: control target
= control target key end

     0   :  { %8 = vsyncpa [#allocation3], 0  ;;  %s3522_s0 = inlined_call_operand.vmem [shape: f32[16,16,16], index: 0, kind: input, shape index: {}]   ;;  %s3523_s1 = inlined_call_operand.vmem [shape: f32[16,16,8], index: 1, kind: input, shape index: {}]   ;;  %s3524_s2 = inlined_call_operand.vmem [shape: f32[48,128], index: 2, kind: input, shape index: {}]   ;;  %s3525_s3 = inlined_call_operand.hbm [shape: f32[16,16,128], index: 3, kind: output, shape index: {}]  }
   0x1   :  { %10 = vsyncpa [#allocation3 + $0x1], 0  ;;  %s2926_s12 = smov 0   ;;  %s2928_s13 = smov 0  }
   0x2   :  { %s2930_s14 = smov 0   ;;  %s2932_s15 = smov 0  }
   0x3 LB: > { %s2947_s16 = sadd.s32 4294967295, %s2900_s15   ;;  %s2318_s17 = sadd.s32 4294967294, %s2900_s15   ;;  %s2900_s15 = sphi %s2932_s15, %s3531_s15   ;;  %s2896_s14 = sphi %s2930_s14, %s3530_s14   ;;  %s2892_s13 = sphi %s2928_s13, %s3529_s13   ;;  %s2888_s12 = sphi %s2926_s12, %s3528_s12  }
   0x4   : > { %s2951_s18 = sadd.s32 1, %s2900_s15   ;;  %s96_s19 = sadd.s32 1, %s2896_s14 }
   0x5   : > { %s93_s20 = ssub.s32 %s2900_s15, %s2951_s18  ;;  %p106_p0 = scmp.ne.s32.totalorder %s2896_s14, %s2892_s13 }
   0x6   : > { %p94_p1 = scmp.eq.s32.totalorder %s93_s20, 0  ;;  %p107_p2 = scmp.eq.s32.totalorder %s2947_s16, 1 }
   0x7   : > { %p112_p3 = scmp.ne.s32.totalorder %s2892_s13, %s2888_s12  ;;  %p113_p4 = scmp.eq.s32.totalorder %s2318_s17, 1 }
   0x8   : > { %s2962_s21 = scalar_select %p94_p1, %s2896_s14, %s96_s19  }
   0x9   : > { %p2964_p5 = por %p107_p2, %p106_p0  ;;  %p2968_p6 = por %p113_p4, %p112_p3 }
   0xa   : > { %p2321_p7 = scmp.ge.s32.totalorder %s2900_s15, 1  ;;  %p154_p8 = scmp.lt.s32.totalorder %s2900_s15, 3 }
   0xc   : > { %p155_p9 = pnand %p2321_p7, %p154_p8 }
   0xd   : > { %s2323_s24 = sshll.u32 (!%p155_p9), %s2947_s16, 3  ;;  %vm223_vm0 = vcmask (!%p155_p9), 130048   ;;  %vm1076_vm1 = vcmask (!%p155_p9), 64512   ;;  %vm1286_vm2 = vcmask (!%p155_p9), 261120   ;;  %s182_s29 = sand.u32 (!%p155_p9), 1, %s2892_s13   ;;  %vm2196_vm3 = vcmask (!%p155_p9), 293888  }
   0xe   : > { %158 = sbr.rel (%p155_p9) target bundleno = 1220 (0x4c4), region = 32  ;;  %p186_p10 = scmp.lt.s32.totalorder (!%p155_p9), %s2323_s24, 15 }
   0xf   : > { %s2322_s30 = sshll.u32 (!%p155_p9), %s182_s29, 7  ;;  %s2404_s5 = sshll.u32 (!%p155_p9), %s2947_s16, 11 }
  0x10   : > { %s3470_s9 = scalar_lea.hbm (!%p155_p9), %s3525_s3, %s2404_s5  ;;  %s3481_s16 = scalar_lea.sflag (!%p155_p9), [#allocation3], %s182_s29 }
  0x11   : > { %s2903_s11 = smov (!%p155_p9), [#allocation2]  }
  0x12   : > { %s2842_s17 = sshll.u32 (!%p155_p9), %s2903_s11, 4  ;;  %s2843_s17 = int_to_ptr.vmem [resolvable:$false] %s2842_s17 }
  0x13   : > { %s2844_s19 = scalar_lea.vmem (!%p155_p9), %s2843_s17, 4096 }
  0x15   : > { %s3533_s24 = smov (!%p186_p10, %s2323_s24), 15 }
  0x16   : > { %s2401_s25 = sshll.u32 %s3533_s24, 4 }
  0x17   : > { %s2983_s28 = scalar_lea.vmem %s3522_s0, %s2401_s25  ;;  %s3084_s4 = scalar_lea.vmem %s3523_s1, %s2401_s25 }
  0x18   : > { %v2986_v0 = vld [vmem:[%s2983_s28] sm:$0xff]  ;;  %v2989_v1 = vld [vmem:[%s2983_s28 + $0x10] sm:$0xff]  ;;  %v2992_v2 = vld [vmem:[%s2983_s28 + $0x8] sm:$0xff] }
  0x19   : > { %v224_v3 = vsel %vm223_vm0, %v2986_v0, 0.0  ;;  %v230_v4 = vsel %vm223_vm0, %v2989_v1, 0.0  ;;  %v227_v5 = vsel %vm223_vm0, %v2992_v2, 0.0  ;;  %v3001_v6 = vld [vmem:[%s2983_s28 + $0x18] sm:$0xff]  ;;  %v3004_v7 = vld [vmem:[%s2983_s28 + $0x20] sm:$0xff]  ;;  %v3007_v8 = vld [vmem:[%s2983_s28 + $0x28] sm:$0xff] }
  0x1a   : > { %225 = vadd.xlane.f32.xlu0 %v224_v3  ;;  %231 = vadd.xlane.f32.xlu1 %v230_v4  ;;  %v3009_v9 = vadd.f32 %v227_v5, %v224_v3  ;;  %v233_v10 = vsel %vm223_vm0, %v3001_v6, 0.0  ;;  %v236_v11 = vsel %vm223_vm0, %v3004_v7, 0.0  ;;  %v239_v12 = vsel %vm223_vm0, %v3007_v8, 0.0  ;;  %v3018_v13 = vld [vmem:[%s2983_s28 + $0x30] sm:$0xff]  ;;  %v3021_v14 = vld [vmem:[%s2983_s28 + $0x38] sm:$0xff]  ;;  %v3024_v15 = vld [vmem:[%s2983_s28 + $0x40] sm:$0xff] }
  0x1b   : > { %v295_v16 = vadd.f32 %v233_v10, %v230_v4  ;;  %v3026_v17 = vadd.f32 %v239_v12, %v236_v11  ;;  %v242_v18 = vsel %vm223_vm0, %v3018_v13, 0.0  ;;  %v245_v19 = vsel %vm223_vm0, %v3021_v14, 0.0  ;;  %v3033_v20 = vld [vmem:[%s2983_s28 + $0x48] sm:$0xff]  ;;  %v3036_v21 = vld [vmem:[%s2983_s28 + $0x50] sm:$0xff]  ;;  %v3039_v22 = vld [vmem:[%s2983_s28 + $0x58] sm:$0xff] }
  0x1c   : > { %v3041_v23 = vadd.f32 %v245_v19, %v242_v18  ;;  %v248_v24 = vsel %vm223_vm0, %v3024_v15, 0.0  ;;  %v251_v25 = vsel %vm223_vm0, %v3033_v20, 0.0  ;;  %v254_v27 = vsel %vm223_vm0, %v3036_v21, 0.0  ;;  %v3054_v29 = vld [vmem:[%s2983_s28 + $0x60] sm:$0xff]  ;;  %v3057_v30 = vld [vmem:[%s2983_s28 + $0x68] sm:$0xff]  ;;  %v3062_v32 = vld [vmem:[%s2983_s28 + $0x70] sm:$0xff] }
  0x1d   : > { %v3047_v26 = vadd.f32 %v251_v25, %v248_v24  ;;  %v257_v28 = vsel %vm223_vm0, %v3039_v22, 0.0  ;;  %v3065_v33 = vld [vmem:[%s2983_s28 + $0x78] sm:$0xff]  ;;  %v260_v34 = vsel %vm223_vm0, %v3054_v29, 0.0  ;;  %v263_v35 = vsel %vm223_vm0, %v3057_v30, 0.0  ;;  %v408_v40 = vld [vmem:[%s3084_s4] sm:$0xff]  ;;  %v409_v41 = vld [vmem:[%s3084_s4 + $0x8] sm:$0xff] }
  0x1e   : > { %228 = vadd.xlane.f32.xlu0 %v227_v5  ;;  %234 = vadd.xlane.f32.xlu1 %v233_v10  ;;  %v3059_v31 = vadd.f32 %v257_v28, %v254_v27  ;;  %v3071_v36 = vadd.f32 %v263_v35, %v260_v34  ;;  %v266_v37 = vsel %vm223_vm0, %v3062_v32, 0.0  ;;  %v269_v38 = vsel %vm223_vm0, %v3065_v33, 0.0  ;;  %v410_v43 = vld [vmem:[%s3084_s4 + $0x10] sm:$0xff]  ;;  %v411_v44 = vld [vmem:[%s3084_s4 + $0x18] sm:$0xff]  ;;  %v412_v46 = vld [vmem:[%s3084_s4 + $0x20] sm:$0xff]  ;;  %s2902_s28 = smov 32  }
  0x1f   : > { %v3077_v39 = vadd.f32 %v269_v38, %v266_v37  ;;  %v2676_v42 = vpack.c.bf16 %v409_v41, %v408_v40  ;;  %v2680_v45 = vpack.c.bf16 %v411_v44, %v410_v43  ;;  %v413_v47 = vld [vmem:[%s3084_s4 + $0x28] sm:$0xff]  ;;  %v414_v49 = vld [vmem:[%s3084_s4 + $0x30] sm:$0xff]  ;;  %v415_v50 = vld [vmem:[%s3084_s4 + $0x38] sm:$0xff]  ;;  %v289_v52 = vrot.slane %v3009_v9, 4 }
  0x20   : > { %v3092_v48 = vpack.c.bf16 %v413_v47, %v412_v46  ;;  %v3097_v51 = vpack.c.bf16 %v415_v50, %v414_v49  ;;  %v296_v53 = vrot.slane %v295_v16, 4  ;;  %v303_v58 = vrot.slane %v3026_v17, 4 }
  0x21   : > { %2677 = vmatprep.subr.bf16.mxu0 %v2676_v42  ;;  %2681 = vmatprep.subr.bf16.mxu1 %v2680_v45  ;;  %v290_v54 = vadd.f32 %v289_v52, %v3009_v9  ;;  %v310_v60 = vrot.slane %v3041_v23, 4  ;;  %v317_v63 = vrot.slane %v3047_v26, 4 }
  0x22   : > { %237 = vadd.xlane.f32.xlu0 %v236_v11  ;;  %240 = vadd.xlane.f32.xlu1 %v239_v12  ;;  %v297_v55 = vadd.f32 %v296_v53, %v295_v16  ;;  %v304_v62 = vadd.f32 %v303_v58, %v3026_v17  ;;  %v324_v11 = vrot.slane %v3059_v31, 4 }
  0x23   : > { %2679 = vmatpush3.bf16.msra.mxu0 %v2676_v42  ;;  %2683 = vmatpush3.bf16.msra.mxu1 %v2680_v45  ;;  %v291_v56 = vrot.slane %v290_v54, 2  ;;  %v311_v4 = vadd.f32 %v310_v60, %v3041_v23  ;;  %v318_v9 = vadd.f32 %v317_v63, %v3047_v26 }
  0x24   : > { %2685 = vmatprep.subr.bf16.mxu0 %v3092_v48  ;;  %2689 = vmatprep.subr.bf16.mxu1 %v3097_v51  ;;  %v298_v57 = vrot.slane %v297_v55, 2  ;;  %v305_v10 = vrot.slane %v304_v62, 2 }
  0x25   : > { %v292_v59 = vadd.f32 %v291_v56, %v290_v54  ;;  %v312_v16 = vrot.slane %v311_v4, 2 }
  0x26   : > { %243 = vadd.xlane.f32.xlu0 %v242_v18  ;;  %246 = vadd.xlane.f32.xlu1 %v245_v19  ;;  %v299_v61 = vadd.f32 %v298_v57, %v297_v55  ;;  %v306_v19 = vadd.f32 %v305_v10, %v304_v62 }
  0x27   : > { %v293_v3 = vrot.slane %v292_v59, 1  ;;  %v313_v17 = vadd.f32 %v312_v16, %v311_v4 }
  0x28   : > { %v300_v5 = vrot.slane %v299_v61, 1 }
  0x29   : > { %v294_v12 = vadd.f32 %v293_v3, %v292_v59  ;;  %v314_v26 = vrot.slane %v313_v17, 1 }
  0x2a   : > { %249 = vadd.xlane.f32.xlu0 %v248_v24  ;;  %252 = vadd.xlane.f32.xlu1 %v251_v25  ;;  %v301_v18 = vadd.f32 %v300_v5, %v299_v61  ;;  %v319_v24 = vrot.slane %v318_v9, 2  ;;  %v325_v25 = vadd.f32 %v324_v11, %v3059_v31  ;;  %v338_v31 = vrot.slane %v3077_v39, 4 }
  0x2b   : > { %v315_v54 = vadd.f32 %v314_v26, %v313_v17 }
  0x2c   : > { %v320_v23 = vadd.f32 %v319_v24, %v318_v9  ;;  %v339_v56 = vadd.f32 %v338_v31, %v3077_v39  ;;  %v418_v31 = vld [vmem:[%s3084_s4 + $0x50] sm:$0xff] }
  0x2d   : > { %v347_v62 = vmax.f32 %v315_v54, 1.0 }
  0x2e   : > { %255 = vadd.xlane.f32.xlu0 %v254_v27  ;;  %258 = vadd.xlane.f32.xlu1 %v257_v28  ;;  %v344_v27 = vmax.f32 %v294_v12, 1.0  ;;  %v345_v28 = vmax.f32 %v301_v18, 1.0  ;;  %v321_v47 = vrot.slane %v320_v23, 1  ;;  %v340_v3 = vrot.slane %v339_v56, 2 }
  0x30   : > { %2790 = vrsqrt.f32 %v344_v27 }
  0x31   : > { %2792 = vrsqrt.f32 %v345_v28 }
  0x32   : > { %261 = vadd.xlane.f32.xlu0 %v260_v34  ;;  %264 = vadd.xlane.f32.xlu1 %v263_v35  ;;  %v307_v34 = vrot.slane %v306_v19, 1  ;;  %v331_v35 = vrot.slane %v3071_v36, 4 }
  0x34   : > { %v308_v43 = vadd.f32 %v307_v34, %v306_v19  ;;  %v332_v44 = vadd.f32 %v331_v35, %v3071_v36  ;;  %v322_v36 = vadd.f32 %v321_v47, %v320_v23 }
  0x36   : > { %267 = vadd.xlane.f32.xlu0 %v266_v37  ;;  %270 = vadd.xlane.f32.xlu1 %v269_v38  ;;  %v326_v37 = vrot.slane %v325_v25, 2  ;;  %v346_v53 = vmax.f32 %v308_v43, 1.0  ;;  %v333_v55 = vrot.slane %v332_v44, 2  ;;  %v348_v39 = vmax.f32 %v322_v36, 1.0 }
  0x38   : > { %v327_v49 = vadd.f32 %v326_v37, %v325_v25  ;;  %v334_v63 = vadd.f32 %v333_v55, %v332_v44  ;;  %v341_v25 = vadd.f32 %v340_v3, %v339_v56 }
  0x3a   : > { %v328_v59 = vrot.slane %v327_v49, 1  ;;  %v2791_v4 = vpop.eup %2790  ;;  %v335_v24 = vrot.slane %v334_v63, 1  ;;  %v342_v44 = vrot.slane %v341_v25, 1 }
  0x3b   : > { %v2793_v5 = vpop.eup %2792 }
  0x3c   : > { %v329_v12 = vadd.f32 %v328_v59, %v327_v49  ;;  %v343_v59 = vadd.f32 %v342_v44, %v341_v25 }
  0x3e   : > { %v349_v37 = vmax.f32 %v329_v12, 1.0 }
  0xa7   : > { %v226_v38 = vpop.xlane.xlu0 %225  ;;  %v232_v40 = vpop.xlane.xlu1 %231 }
  0xa8   : > { %v272_v41 = vmax.f32 %v226_v38, 1.0  ;;  %v274_v42 = vmax.f32 %v232_v40, 1.0 }
  0xaa   : > { %2794 = vrsqrt.f32 %v272_v41  ;;  %v416_v41 = vld [vmem:[%s3084_s4 + $0x40] sm:$0xff] }
  0xab   : > { %2796 = vrsqrt.f32 %v274_v42  ;;  %v229_v45 = vpop.xlane.xlu0 %228  ;;  %v235_v46 = vpop.xlane.xlu1 %234  ;;  %v417_v42 = vld [vmem:[%s3084_s4 + $0x48] sm:$0xff] }
  0xac   : > { %v273_v50 = vmax.f32 %v229_v45, 1.0  ;;  %v275_v52 = vmax.f32 %v235_v46, 1.0  ;;  %v419_v45 = vld [vmem:[%s3084_s4 + $0x58] sm:$0xff] }
  0xae   : > { %2798 = vrsqrt.f32 %v273_v50 }
  0xaf   : > { %2800 = vrsqrt.f32 %v275_v52  ;;  %v238_v57 = vpop.xlane.xlu0 %237  ;;  %v241_v58 = vpop.xlane.xlu1 %240 }
  0xb0   : > { %v276_v60 = vmax.f32 %v238_v57, 1.0  ;;  %v277_v61 = vmax.f32 %v241_v58, 1.0  ;;  %2802 = vrsqrt.f32 %v346_v53  ;;  %v2692_v53 = vpack.c.bf16 %v417_v42, %v416_v41 }
  0xb1   : > { %v2696_v57 = vpack.c.bf16 %v419_v45, %v418_v31 }
  0xb2   : > { %2804 = vrsqrt.f32 %v276_v60  ;;  %v420_v60 = vld [vmem:[%s3084_s4 + $0x60] sm:$0xff] }
  0xb3   : > { %2806 = vrsqrt.f32 %v277_v61  ;;  %v244_v10 = vpop.xlane.xlu0 %243  ;;  %v247_v9 = vpop.xlane.xlu1 %246  ;;  %v421_v61 = vld [vmem:[%s3084_s4 + $0x68] sm:$0xff] }
  0xb4   : > { %v2795_v11 = vpop.eup %2794  ;;  %v278_v16 = vmax.f32 %v244_v10, 1.0  ;;  %v279_v18 = vmax.f32 %v247_v9, 1.0  ;;  %2808 = vrsqrt.f32 %v347_v62 }
  0xb5   : > { %v2797_v19 = vpop.eup %2796  ;;  %v368_v27 = vmul.f32 %v2795_v11, %v2986_v0  ;;  %v336_v0 = vadd.f32 %v335_v24, %v334_v63  ;;  %v2700_v11 = vpack.c.bf16 %v421_v61, %v420_v60 }
  0xb6   : > { %2810 = vrsqrt.f32 %v278_v16  ;;  %v370_v17 = vmul.f32 %v2797_v19, %v2989_v1  ;;  %v422_v16 = vld [vmem:[%s3084_s4 + $0x70] sm:$0xff] }
  0xb7   : > { %2812 = vrsqrt.f32 %v279_v18  ;;  %v3116_v28 = vmul.f32 %v2791_v4, %v368_v27  ;;  %v250_v34 = vpop.xlane.xlu0 %249  ;;  %v253_v35 = vpop.xlane.xlu1 %252  ;;  %v350_v36 = vmax.f32 %v336_v0, 1.0  ;;  %v423_v18 = vld [vmem:[%s3084_s4 + $0x78] sm:$0xff]  ;;  %s3395_s4 = scalar_lea.vmem [#allocation2], %s2322_s30 }
  0xb8   : > { %v2799_v23 = vpop.eup %2798  ;;  %v280_v38 = vmax.f32 %v250_v34, 1.0  ;;  %v281_v40 = vmax.f32 %v253_v35, 1.0  ;;  %v3118_v26 = vmul.f32 %v2793_v5, %v370_v17  ;;  %2814 = vrsqrt.f32 %v348_v39  ;;  %s2244_s6 = sshll.u32 %s3395_s4, 4  ;;  %s3472_s6 = int_to_ptr.vmem [resolvable:$true] %s2244_s6 }
  0xb9   : > { %v2801_v43 = vpop.eup %2800  ;;  %2510 = vmatprep.mubr.msk.f32.mxu0 %vm223_vm0, %v3116_v28  ;;  %v369_v1 = vmul.f32 %v2799_v23, %v2992_v2  ;;  %s2838_s10 = scalar_lea.vmem %s3472_s6, 2048  ;;  %p2845_p0 = scmp.lt.s32.totalorder %s3472_s6, %s2843_s17 }
  0xba   : > { %2816 = vrsqrt.f32 %v280_v38  ;;  %2517 = vmatprep.mubr.msk.f32.mxu1 %vm223_vm0, %v3118_v26  ;;  %v371_v46 = vmul.f32 %v2801_v43, %v3001_v6  ;;  %v2803_v47 = vpop.eup %2802  ;;  %p2839_p11 = scmp.ne.s32.totalorder %s3472_s6, %s2838_s10  ;;  %p2846_p1 = scmp.lt.s32.totalorder %s2844_s19, %s2838_s10 }
  0xbb   : > { %2818 = vrsqrt.f32 %v281_v40  ;;  %v3130_v49 = vmul.f32 %v2791_v4, %v369_v1  ;;  %v256_v50 = vpop.xlane.xlu0 %255  ;;  %v259_v52 = vpop.xlane.xlu1 %258 }
  0xbc   : > { %v2805_v54 = vpop.eup %2804  ;;  %v282_v55 = vmax.f32 %v256_v50, 1.0  ;;  %v283_v2 = vmax.f32 %v259_v52, 1.0  ;;  %v3132_v56 = vmul.f32 %v2793_v5, %v371_v46  ;;  %2820 = vrsqrt.f32 %v349_v37  ;;  %p2840_p12 = pnand %p2839_p11, %p2964_p5  ;;  %p2847_p2 = por %p2846_p1, %p2845_p0 }
  0xbd   : > { %v2807_v58 = vpop.eup %2806  ;;  %2511 = vmatmul.mubr.msk.f32.vlgmr.msra.gmra.mrb[0].mxu0 %vm223_vm0, %v3130_v49  ;;  %v372_v6 = vmul.f32 %v2805_v54, %v3004_v7 }
  0xbe   : > { %v373_v62 = vmul.f32 %v2807_v58, %v3007_v8  ;;  %2822 = vrsqrt.f32 %v282_v55  ;;  %2518 = vmatmul.mubr.msk.f32.vlgmr.msra.gmra.mrb[0].mxu1 %vm223_vm0, %v3132_v56  ;;  %2687 = vmatpush3.bf16.msra.mxu0 %v3092_v48  ;;  %v2809_v63 = vpop.eup %2808  ;;  %v351_v48 = vmax.f32 %v343_v59, 1.0  ;;  %p2841_p13 = pneg %p2840_p12 }
  0xbf   : > { %2824 = vrsqrt.f32 %v283_v2  ;;  %v262_v3 = vpop.xlane.xlu0 %261  ;;  %v265_v4 = vpop.xlane.xlu1 %264  ;;  %v3143_v5 = vmul.f32 %v2803_v47, %v372_v6  ;;  %2691 = vmatpush3.bf16.msra.mxu1 %v3097_v51  ;;  %2693 = vmatprep.subr.bf16.mxu0 %v2692_v53 }
  0xc0   : > { %v2811_v7 = vpop.eup %2810  ;;  %v284_v10 = vmax.f32 %v262_v3, 1.0  ;;  %v285_v8 = vmax.f32 %v265_v4, 1.0  ;;  %v3146_v9 = vmul.f32 %v2803_v47, %v373_v62  ;;  %2697 = vmatprep.subr.bf16.mxu1 %v2696_v57  ;;  %2826 = vrsqrt.f32 %v350_v36  ;;  %p2848_p3 = pnand %p2847_p2, %p2841_p13 }
  0xc1   : > { %v2813_v39 = vpop.eup %2812  ;;  %2524 = vmatprep.mubr.msk.f32.mxu0 %vm223_vm0, %v3143_v5  ;;  %v374_v12 = vmul.f32 %v2811_v7, %v3018_v13  ;;  %v2704_v13 = vpack.c.bf16 %v423_v18, %v422_v16  ;;  %v203_v16 = vld [vmem:[%s3524_s2 + $0x18] sm:$0xff]  ;;  %v204_v18 = vld [vmem:[%s3524_s2 + $0x20] sm:$0xff] }
  0xc2   : > { %v375_v51 = vmul.f32 %v2813_v39, %v3021_v14  ;;  %2828 = vrsqrt.f32 %v284_v10  ;;  %2525 = vmatmul.mubr.msk.f32.vlgmr.msra.gmra.mrb[2].mxu0 %vm223_vm0, %v3146_v9  ;;  %v2815_v19 = vpop.eup %2814 }
  0xc3   : > { %2830 = vrsqrt.f32 %v285_v8  ;;  %v268_v24 = vpop.xlane.xlu0 %267  ;;  %v271_v25 = vpop.xlane.xlu1 %270  ;;  %v3156_v27 = vmul.f32 %v2809_v63, %v374_v12  ;;  %2695 = vmatpush3.bf16.msra.mxu0 %v2692_v53 }
  0xc4   : > { %v2817_v17 = vpop.eup %2816  ;;  %v286_v34 = vmax.f32 %v268_v24, 1.0  ;;  %v287_v35 = vmax.f32 %v271_v25, 1.0  ;;  %v3158_v23 = vmul.f32 %v2809_v63, %v375_v51  ;;  %2701 = vmatprep.subr.bf16.mxu0 %v2700_v11  ;;  %2832 = vrsqrt.f32 %v351_v48 }
  0xc5   : > { %v2819_v37 = vpop.eup %2818  ;;  %2531 = vmatprep.mubr.msk.f32.mxu1 %vm223_vm0, %v3156_v27  ;;  %v376_v14 = vmul.f32 %v2817_v17, %v3024_v15  ;;  %v2712_v51 = vpack.c.bf16 %v204_v18, %v203_v16 }
  0xc6   : > { %v377_v38 = vmul.f32 %v2819_v37, %v3033_v20  ;;  %2834 = vrsqrt.f32 %v286_v34  ;;  %2532 = vmatmul.mubr.msk.f32.vlgmr.msra.gmra.mrb[2].mxu1 %vm223_vm0, %v3158_v23  ;;  %v2821_v40 = vpop.eup %2820 }
  0xc7   : > { %2836 = vrsqrt.f32 %v287_v35  ;;  %v3166_v41 = vmul.f32 %v2815_v19, %v376_v14  ;;  %2699 = vmatpush3.bf16.msra.mxu1 %v2696_v57  ;;  %v200_v57 = vld [vmem:[%s3524_s2] sm:$0xff] }
  0xc8   : > { %v2823_v42 = vpop.eup %2822  ;;  %v3168_v43 = vmul.f32 %v2815_v19, %v377_v38  ;;  %2705 = vmatprep.subr.bf16.mxu1 %v2704_v13  ;;  %v2345_v19 = vld [vmem:[%s3524_s2 + $0x28] ss:$0 sm:$0xff] }
  0xc9   : > { %v2825_v0 = vpop.eup %2824  ;;  %2538 = vmatprep.mubr.msk.f32.mxu0 %vm223_vm0, %v3166_v41  ;;  %v378_v15 = vmul.f32 %v2823_v42, %v3036_v21 }
  0xca   : > { %v379_v20 = vmul.f32 %v2825_v0, %v3039_v22  ;;  %2539 = vmatmul.mubr.msk.f32.vlgmr.msra.gmra.mrb[4].mxu0 %vm223_vm0, %v3168_v43  ;;  %v2827_v44 = vpop.eup %2826 }
  0xcb   : > { %v3176_v1 = vmul.f32 %v2821_v40, %v378_v15  ;;  %2703 = vmatpush3.bf16.msra.mxu0 %v2700_v11 }
  0xcc   : > { %v2829_v31 = vpop.eup %2828  ;;  %v3178_v45 = vmul.f32 %v2821_v40, %v379_v20  ;;  %2562 = vmatprep.subr.mxu0 %v200_v57 }
  0xcd   : > { %v2831_v46 = vpop.eup %2830  ;;  %2545 = vmatprep.mubr.msk.f32.mxu1 %vm223_vm0, %v3176_v1  ;;  %v380_v47 = vmul.f32 %v2829_v31, %v3054_v29 }
  0xce   : > { %v381_v21 = vmul.f32 %v2831_v46, %v3057_v30  ;;  %2546 = vmatmul.mubr.msk.f32.vlgmr.msra.gmra.mrb[4].mxu1 %vm223_vm0, %v3178_v45  ;;  %v2833_v22 = vpop.eup %2832 }
  0xcf   : > { %v3186_v50 = vmul.f32 %v2827_v44, %v380_v47  ;;  %2707 = vmatpush3.bf16.msra.mxu1 %v2704_v13 }
  0xd0   : > { %v2835_v52 = vpop.eup %2834  ;;  %v3188_v53 = vmul.f32 %v2827_v44, %v381_v21 }
  0xd1   : > { %v2837_v54 = vpop.eup %2836  ;;  %2552 = vmatprep.mubr.msk.f32.mxu0 %vm223_vm0, %v3186_v50  ;;  %v382_v55 = vmul.f32 %v2835_v52, %v3062_v32  ;;  %v201_v32 = vld [vmem:[%s3524_s2 + $0x8] sm:$0xff] }
  0xd2   : > { %v383_v29 = vmul.f32 %v2837_v54, %v3065_v33  ;;  %2553 = vmatmul.mubr.msk.f32.vlgmr.msra.gmra.mrb[6].mxu0 %vm223_vm0, %v3188_v53  ;;  %v202_v33 = vld [vmem:[%s3524_s2 + $0x10] sm:$0xff] }
  0xd3   : > { %v3196_v30 = vmul.f32 %v2833_v22, %v382_v55  ;;  %2563 = vmatpush3.msra.mxu0 %v200_v57  ;;  %v2708_v58 = vpack.c.bf16 %v202_v33, %v201_v32 }
  0xd4   : > { %v3198_v2 = vmul.f32 %v2833_v22, %v383_v29 }
  0xd5   : > { %2559 = vmatprep.mubr.msk.f32.mxu1 %vm223_vm0, %v3196_v30  ;;  %2709 = vmatprep.subr.bf16.mxu1 %v2708_v58 }
  0xd6   : > { %2560 = vmatmul.mubr.msk.f32.vlgmr.msra.gmra.mrb[6].mxu1 %vm223_vm0, %v3198_v2 }
  0xd7   : > { %2711 = vmatpush3.bf16.msra.mxu1 %v2708_v58 }
  0xd8   : > { %2713 = vmatprep.subr.bf16.mxu1 %v2712_v51 }
  0xdb   : > { %2715 = vmatpush3.bf16.msra.mxu1 %v2712_v51 }
 0x190   : > { %v2512_v36 = vpop.f32.mrb[0].mxu0 }
 0x191   : > { %v496_v59 = vpop.f32.mrb[1].mxu0  ;;  %v2519_v6 = vpop.f32.mrb[0].mxu1 }
 0x192   : > { %2564 = vmatprep.mubr.msk.f32.mxu0 %vm1076_vm1, %v496_v59  ;;  %v577_v60 = vpop.f32.mrb[1].mxu1 }
 0x193   : > { %2565 = vmatmul.mubr.msk.f32.vlgmr.msra.gmra.mrb[8].mxu0 %vm1076_vm1, %v2512_v36 }
 0x194   : > { %2567 = vmatprep.mubr.msk.f32.mxu0 %vm1076_vm1, %v577_v60 }
 0x195   : > { %v2526_v61 = vpop.f32.mrb[2].mxu0 }
 0x196   : > { %v658_v62 = vpop.f32.mrb[3].mxu0 }
 0x197   : > { %2568 = vmatmul.mubr.msk.f32.gmra.mrb[10].mxu0 %vm1076_vm1, %v2519_v6 }
 0x198   : > { %2570 = vmatprep.mubr.msk.f32.mxu0 %vm1076_vm1, %v658_v62 }
 0x199   : > { %v2533_v63 = vpop.f32.mrb[2].mxu1 }
 0x19a   : > { %v739_v3 = vpop.f32.mrb[3].mxu1 }
 0x19b   : > { %2571 = vmatmul.mubr.msk.f32.gmra.mrb[12].mxu0 %vm1076_vm1, %v2526_v61 }
 0x19c   : > { %2573 = vmatprep.mubr.msk.f32.mxu0 %vm1076_vm1, %v739_v3 }
 0x19d   : > { %v2540_v4 = vpop.f32.mrb[4].mxu0 }
 0x19e   : > { %v820_v7 = vpop.f32.mrb[5].mxu0 }
 0x19f   : > { %2574 = vmatmul.mubr.msk.f32.gmra.mrb[14].mxu0 %vm1076_vm1, %v2533_v63 }
 0x1a0   : > { %2576 = vmatprep.mubr.msk.f32.mxu0 %vm1076_vm1, %v820_v7 }
 0x1a1   : > { %v2547_v10 = vpop.f32.mrb[4].mxu1 }
 0x1a2   : > { %v901_v8 = vpop.f32.mrb[5].mxu1 }
 0x1a3   : > { %2577 = vmatmul.mubr.msk.f32.gmra.mrb[16].mxu0 %vm1076_vm1, %v2540_v4 }
 0x1a4   : > { %2579 = vmatprep.mubr.msk.f32.mxu0 %vm1076_vm1, %v901_v8 }
 0x1a5   : > { %v2554_v11 = vpop.f32.mrb[6].mxu0 }
 0x1a6   : > { %v982_v39 = vpop.f32.mrb[7].mxu0 }
 0x1a7   : > { %2580 = vmatmul.mubr.msk.f32.gmra.mrb[18].mxu0 %vm1076_vm1, %v2547_v10 }
 0x1a8   : > { %2582 = vmatprep.mubr.msk.f32.mxu0 %vm1076_vm1, %v982_v39 }
 0x1a9   : > { %v2561_v48 = vpop.f32.mrb[6].mxu1 }
 0x1aa   : > { %v1063_v12 = vpop.f32.mrb[7].mxu1 }
 0x1ab   : > { %2583 = vmatmul.mubr.msk.f32.gmra.mrb[20].mxu0 %vm1076_vm1, %v2554_v11 }
 0x1ac   : > { %2585 = vmatprep.mubr.msk.f32.mxu0 %vm1076_vm1, %v1063_v12 }
 0x1af   : > { %2586 = vmatmul.mubr.msk.f32.gmra.mrb[22].mxu0 %vm1076_vm1, %v2561_v48 }
 0x1b0   : > { %2624 = vmatprep.mubr.msk.f32.mxu0 %vm223_vm0, %v3116_v28 }
 0x266   : > { %v2566_v24 = vpop.f32.mrb[8].mxu0 }
 0x267   : > { %v3240_v25 = vadd.f32 %v2566_v24, %v2345_v19  ;;  %v1191_v17 = vpop.f32.mrb[9].mxu0 }
 0x268   : > { %v3242_v28 = vadd.f32 %v2345_v19, %v1191_v17 }
 0x269   : > { %v1271_v13 = vmax.f32 %v3240_v25, 0.0 }
 0x26a   : > { %v1270_v34 = vmax.f32 %v3242_v28, 0.0  ;;  %v2569_v35 = vpop.f32.mrb[10].mxu0 }
 0x26b   : > { %v3246_v37 = vadd.f32 %v2569_v35, %v2345_v19  ;;  %v1201_v14 = vpop.f32.mrb[11].mxu0 }
 0x26c   : > { %v3248_v38 = vadd.f32 %v2345_v19, %v1201_v14  ;;  %2596 = vmatprep.mubr.msk.f32.mxu1 %vm1286_vm2, %v1270_v34 }
 0x26d   : > { %2597 = vmatmul.mubr.msk.f32.vlgmr.msra.gmra.mrb[8].mxu1 %vm1286_vm2, %v1271_v13  ;;  %v1273_v0 = vmax.f32 %v3246_v37, 0.0 }
 0x26e   : > { %v1272_v40 = vmax.f32 %v3248_v38, 0.0  ;;  %v2572_v42 = vpop.f32.mrb[12].mxu0 }
 0x26f   : > { %v3258_v15 = vadd.f32 %v2572_v42, %v2345_v19  ;;  %v1211_v20 = vpop.f32.mrb[13].mxu0 }
 0x270   : > { %v3260_v44 = vadd.f32 %v2345_v19, %v1211_v20  ;;  %2599 = vmatprep.mubr.msk.f32.mxu1 %vm1286_vm2, %v1272_v40 }
 0x271   : > { %v1275_v31 = vmax.f32 %v3258_v15, 0.0  ;;  %2600 = vmatmul.mubr.msk.f32.gmra.mrb[10].mxu1 %vm1286_vm2, %v1273_v0 }
 0x272   : > { %v1274_v46 = vmax.f32 %v3260_v44, 0.0  ;;  %v2575_v47 = vpop.f32.mrb[14].mxu0 }
 0x273   : > { %v3270_v21 = vadd.f32 %v2575_v47, %v2345_v19  ;;  %v1221_v22 = vpop.f32.mrb[15].mxu0 }
 0x274   : > { %v3272_v52 = vadd.f32 %v2345_v19, %v1221_v22  ;;  %2602 = vmatprep.mubr.msk.f32.mxu1 %vm1286_vm2, %v1274_v46 }
 0x275   : > { %v1277_v54 = vmax.f32 %v3270_v21, 0.0  ;;  %2603 = vmatmul.mubr.msk.f32.gmra.mrb[12].mxu1 %vm1286_vm2, %v1275_v31 }
 0x276   : > { %v1276_v55 = vmax.f32 %v3272_v52, 0.0  ;;  %v2578_v29 = vpop.f32.mrb[16].mxu0 }
 0x277   : > { %v3282_v57 = vadd.f32 %v2578_v29, %v2345_v19  ;;  %v1231_v32 = vpop.f32.mrb[17].mxu0 }
 0x278   : > { %v3284_v33 = vadd.f32 %v2345_v19, %v1231_v32  ;;  %2605 = vmatprep.mubr.msk.f32.mxu1 %vm1286_vm2, %v1276_v55 }
 0x279   : > { %v1279_v58 = vmax.f32 %v3282_v57, 0.0  ;;  %2606 = vmatmul.mubr.msk.f32.gmra.mrb[14].mxu1 %vm1286_vm2, %v1277_v54 }
 0x27a   : > { %v1278_v36 = vmax.f32 %v3284_v33, 0.0  ;;  %v2581_v59 = vpop.f32.mrb[18].mxu0 }
 0x27b   : > { %v3294_v6 = vadd.f32 %v2581_v59, %v2345_v19  ;;  %v1241_v60 = vpop.f32.mrb[19].mxu0 }
 0x27c   : > { %v3296_v61 = vadd.f32 %v2345_v19, %v1241_v60  ;;  %2608 = vmatprep.mubr.msk.f32.mxu1 %vm1286_vm2, %v1278_v36 }
 0x27d   : > { %v1281_v62 = vmax.f32 %v3294_v6, 0.0  ;;  %2609 = vmatmul.mubr.msk.f32.gmra.mrb[16].mxu1 %vm1286_vm2, %v1279_v58 }
 0x27e   : > { %v1280_v63 = vmax.f32 %v3296_v61, 0.0  ;;  %v2584_v3 = vpop.f32.mrb[20].mxu0 }
 0x27f   : > { %v3306_v4 = vadd.f32 %v2584_v3, %v2345_v19  ;;  %v1251_v7 = vpop.f32.mrb[21].mxu0 }
 0x280   : > { %v3308_v10 = vadd.f32 %v2345_v19, %v1251_v7  ;;  %2611 = vmatprep.mubr.msk.f32.mxu1 %vm1286_vm2, %v1280_v63 }
 0x281   : > { %v1283_v8 = vmax.f32 %v3306_v4, 0.0  ;;  %2612 = vmatmul.mubr.msk.f32.gmra.mrb[18].mxu1 %vm1286_vm2, %v1281_v62 }
 0x282   : > { %v1282_v11 = vmax.f32 %v3308_v10, 0.0  ;;  %v2587_v39 = vpop.f32.mrb[22].mxu0 }
 0x283   : > { %v3318_v48 = vadd.f32 %v2587_v39, %v2345_v19  ;;  %v1261_v12 = vpop.f32.mrb[23].mxu0 }
 0x284   : > { %v3320_v16 = vadd.f32 %v2345_v19, %v1261_v12  ;;  %2614 = vmatprep.mubr.msk.f32.mxu1 %vm1286_vm2, %v1282_v11 }
 0x285   : > { %v1285_v18 = vmax.f32 %v3318_v48, 0.0  ;;  %2615 = vmatmul.mubr.msk.f32.gmra.mrb[20].mxu1 %vm1286_vm2, %v1283_v8 }
 0x286   : > { %v1284_v51 = vmax.f32 %v3320_v16, 0.0 }
 0x288   : > { %2617 = vmatprep.mubr.msk.f32.mxu1 %vm1286_vm2, %v1284_v51 }
 0x289   : > { %2618 = vmatmul.mubr.msk.f32.gmra.mrb[22].mxu1 %vm1286_vm2, %v1285_v18 }
 0x28a   : > { %2638 = vmatprep.mubr.msk.f32.mxu1 %vm223_vm0, %v3143_v5 }
 0x340   : > { %v2598_v19 = vpop.f32.mrb[8].mxu1 }
 0x341   : > { %v1401_v24 = vpop.f32.mrb[9].mxu1 }
 0x342   : > { %v2716_v17 = vpack.c.bf16 %v2598_v19, %v1401_v24 }
 0x344   : > { %v2601_v35 = vpop.f32.mrb[10].mxu1  ;;  %2717 = vmatprep.subr.bf16.mxu0 %v2716_v17 }
 0x345   : > { %v1411_v14 = vpop.f32.mrb[11].mxu1  ;;  %2719 = vmatpush3.bf16.msra.mxu0 %v2716_v17 }
 0x346   : > { %v2720_v42 = vpack.c.bf16 %v2601_v35, %v1411_v14 }
 0x348   : > { %v2604_v20 = vpop.f32.mrb[12].mxu1  ;;  %2625 = vmatmul.mubr.msk.f32.vlgmr.msra.gmra.mrb[24].mxu0 %vm223_vm0, %v3130_v49  ;;  %2721 = vmatprep.subr.bf16.mxu0 %v2720_v42 }
 0x349   : > { %v1421_v47 = vpop.f32.mrb[13].mxu1  ;;  %2723 = vmatpush3.bf16.msra.mxu0 %v2720_v42  ;;  %2631 = vmatprep.mubr.msk.f32.mxu0 %vm223_vm0, %v3118_v26 }
 0x34a   : > { %v2724_v22 = vpack.c.bf16 %v2604_v20, %v1421_v47 }
 0x34c   : > { %v2607_v5 = vpop.f32.mrb[14].mxu1  ;;  %2632 = vmatmul.mubr.msk.f32.vlgmr.msra.gmra.mrb[26].mxu0 %vm223_vm0, %v3132_v56  ;;  %2725 = vmatprep.subr.bf16.mxu1 %v2724_v22 }
 0x34d   : > { %v1431_v29 = vpop.f32.mrb[15].mxu1  ;;  %2727 = vmatpush3.bf16.msra.mxu1 %v2724_v22  ;;  %2645 = vmatprep.mubr.msk.f32.mxu0 %vm223_vm0, %v3156_v27 }
 0x34e   : > { %v2728_v32 = vpack.c.bf16 %v2607_v5, %v1431_v29 }
 0x350   : > { %v2610_v59 = vpop.f32.mrb[16].mxu1  ;;  %2639 = vmatmul.mubr.msk.f32.vlgmr.msra.gmra.mrb[24].mxu1 %vm223_vm0, %v3146_v9  ;;  %2729 = vmatprep.subr.bf16.mxu0 %v2728_v32 }
 0x351   : > { %v1441_v49 = vpop.f32.mrb[17].mxu1  ;;  %2731 = vmatpush3.bf16.msra.mxu0 %v2728_v32  ;;  %2652 = vmatprep.mubr.msk.f32.mxu1 %vm223_vm0, %v3166_v41 }
 0x352   : > { %v2732_v26 = vpack.c.bf16 %v2610_v59, %v1441_v49 }
 0x354   : > { %v2613_v60 = vpop.f32.mrb[18].mxu1  ;;  %2646 = vmatmul.mubr.msk.f32.vlgmr.msra.gmra.mrb[28].mxu0 %vm223_vm0, %v3158_v23  ;;  %2733 = vmatprep.subr.bf16.mxu1 %v2732_v26 }
 0x355   : > { %v1451_v56 = vpop.f32.mrb[19].mxu1  ;;  %2735 = vmatpush3.bf16.msra.mxu1 %v2732_v26  ;;  %2659 = vmatprep.mubr.msk.f32.mxu0 %vm223_vm0, %v3176_v1 }
 0x356   : > { %v2736_v27 = vpack.c.bf16 %v2613_v60, %v1451_v56 }
 0x358   : > { %v2616_v3 = vpop.f32.mrb[20].mxu1  ;;  %2653 = vmatmul.mubr.msk.f32.vlgmr.msra.gmra.mrb[26].mxu1 %vm223_vm0, %v3168_v43  ;;  %2737 = vmatprep.subr.bf16.mxu0 %v2736_v27  ;;  %v2394_v43 = vld [vmem:[%s3524_s2 + $0x29] ss:$0 sm:$0xff] }
 0x359   : > { %v1461_v9 = vpop.f32.mrb[21].mxu1  ;;  %2739 = vmatpush3.bf16.msra.mxu0 %v2736_v27  ;;  %2666 = vmatprep.mubr.msk.f32.mxu1 %vm223_vm0, %v3186_v50 }
 0x35a   : > { %v2740_v41 = vpack.c.bf16 %v2616_v3, %v1461_v9 }
 0x35c   : > { %v2619_v7 = vpop.f32.mrb[22].mxu1  ;;  %2660 = vmatmul.mubr.msk.f32.vlgmr.msra.gmra.mrb[30].mxu0 %vm223_vm0, %v3178_v45  ;;  %2741 = vmatprep.subr.bf16.mxu1 %v2740_v41 }
 0x35d   : > { %v1471_v23 = vpop.f32.mrb[23].mxu1  ;;  %2743 = vmatpush3.bf16.msra.mxu1 %v2740_v41  ;;  %2673 = vmatprep.mubr.msk.f32.mxu0 %vm223_vm0, %v3196_v30 }
 0x35e   : > { %v2744_v1 = vpack.c.bf16 %v2619_v7, %v1471_v23 }
 0x360   : > { %2667 = vmatmul.mubr.msk.f32.vlgmr.msra.gmra.mrb[28].mxu1 %vm223_vm0, %v3188_v53  ;;  %2745 = vmatprep.subr.bf16.mxu0 %v2744_v1 }
 0x361   : > { %2747 = vmatpush3.bf16.msra.mxu0 %v2744_v1 }
 0x364   : > { %2674 = vmatmul.mubr.msk.f32.vlgmr.msra.gmra.mrb[32].mxu0 %vm223_vm0, %v3198_v2 }
 0x41b   : > { %v2626_v45 = vpop.f32.mrb[24].mxu0 }
 0x41c   : > { %v2085_v50 = vadd.f32 %v2626_v45, %v2394_v43  ;;  %v1546_v39 = vpop.f32.mrb[25].mxu0 }
 0x41d   : > { %v2084_v12 = vadd.f32 %v2394_v43, %v1546_v39 }
 0x41e   : > { %v2101_v19 = vmax.f32 %v2085_v50, 0.0 }
 0x41f   : > { %v2100_v24 = vmax.f32 %v2084_v12, 0.0  ;;  %v2633_v30 = vpop.f32.mrb[26].mxu0 }
 0x420   : > { %v2087_v17 = vadd.f32 %v2633_v30, %v2394_v43  ;;  %2134 = vrot.lane.b32.xlu1 %v2101_v19, %s2902_s28  ;;  %v1621_v53 = vpop.f32.mrb[27].mxu0 }
 0x421   : > { %2132 = vrot.lane.b32.xlu0 %v2100_v24, %s2902_s28  ;;  %v2086_v2 = vadd.f32 %v2394_v43, %v1621_v53 }
 0x422   : > { %v2103_v35 = vmax.f32 %v2087_v17, 0.0 }
 0x423   : > { %v2640_v14 = vpop.f32.mrb[24].mxu1  ;;  %v2102_v47 = vmax.f32 %v2086_v2, 0.0 }
 0x424   : > { %2138 = vrot.lane.b32.xlu1 %v2103_v35, %s2902_s28  ;;  %v1696_v42 = vpop.f32.mrb[25].mxu1  ;;  %v2089_v22 = vadd.f32 %v2640_v14, %v2394_v43 }
 0x425   : > { %v2088_v20 = vadd.f32 %v2394_v43, %v1696_v42 }
 0x426   : > { %v2105_v49 = vmax.f32 %v2089_v22, 0.0 }
 0x427   : > { %v2104_v5 = vmax.f32 %v2088_v20, 0.0  ;;  %v2647_v29 = vpop.f32.mrb[28].mxu0 }
 0x428   : > { %2136 = vrot.lane.b32.xlu1 %v2102_v47, %s2902_s28  ;;  %v1771_v32 = vpop.f32.mrb[29].mxu0  ;;  %v2091_v26 = vadd.f32 %v2647_v29, %v2394_v43 }
 0x429   : > { %v2090_v59 = vadd.f32 %v2394_v43, %v1771_v32  ;;  %2140 = vrot.lane.b32.xlu0 %v2104_v5, %s2902_s28 }
 0x42a   : > { %v2107_v9 = vmax.f32 %v2091_v26, 0.0 }
 0x42b   : > { %v2106_v60 = vmax.f32 %v2090_v59, 0.0  ;;  %v2654_v56 = vpop.f32.mrb[26].mxu1 }
 0x42c   : > { %2142 = vrot.lane.b32.xlu1 %v2105_v49, %s2902_s28  ;;  %v1846_v27 = vpop.f32.mrb[27].mxu1  ;;  %v2093_v41 = vadd.f32 %v2654_v56, %v2394_v43 }
 0x42d   : > { %v2092_v3 = vadd.f32 %v2394_v43, %v1846_v27  ;;  %2144 = vrot.lane.b32.xlu0 %v2106_v60, %s2902_s28 }
 0x42e   : > { %v2109_v50 = vmax.f32 %v2093_v41, 0.0 }
 0x42f   : > { %v2108_v7 = vmax.f32 %v2092_v3, 0.0  ;;  %v2661_v23 = vpop.f32.mrb[30].mxu0 }
 0x430   : > { %v1921_v1 = vpop.f32.mrb[31].mxu0  ;;  %2146 = vrot.lane.b32.xlu1 %v2107_v9, %s2902_s28  ;;  %v2095_v39 = vadd.f32 %v2661_v23, %v2394_v43 }
 0x431   : > { %v2094_v45 = vadd.f32 %v2394_v43, %v1921_v1  ;;  %2148 = vrot.lane.b32.xlu0 %v2108_v7, %s2902_s28 }
 0x432   : > { %v2111_v17 = vmax.f32 %v2095_v39, 0.0 }
 0x433   : > { %v2110_v12 = vmax.f32 %v2094_v45, 0.0  ;;  %v2668_v19 = vpop.f32.mrb[28].mxu1 }
 0x434   : > { %2150 = vrot.lane.b32.xlu1 %v2109_v50, %s2902_s28  ;;  %v1996_v24 = vpop.f32.mrb[29].mxu1  ;;  %v2097_v53 = vadd.f32 %v2668_v19, %v2394_v43 }
 0x435   : > { %v2096_v30 = vadd.f32 %v2394_v43, %v1996_v24  ;;  %2152 = vrot.lane.b32.xlu0 %v2110_v12, %s2902_s28 }
 0x436   : > { %v2113_v20 = vmax.f32 %v2097_v53, 0.0 }
 0x437   : > { %v2112_v35 = vmax.f32 %v2096_v30, 0.0  ;;  %v2675_v2 = vpop.f32.mrb[32].mxu0 }
 0x438   : > { %v2071_v14 = vpop.f32.mrb[33].mxu0  ;;  %2154 = vrot.lane.b32.xlu1 %v2111_v17, %s2902_s28  ;;  %v2099_v47 = vadd.f32 %v2675_v2, %v2394_v43 }
 0x439   : > { %v2098_v42 = vadd.f32 %v2394_v43, %v2071_v14  ;;  %2156 = vrot.lane.b32.xlu0 %v2112_v35, %s2902_s28 }
 0x43a   : > { %v2115_v5 = vmax.f32 %v2099_v47, 0.0 }
 0x43b   : > { %v2114_v22 = vmax.f32 %v2098_v42, 0.0 }
 0x43c   : > { %2158 = vrot.lane.b32.xlu1 %v2113_v20, %s2902_s28 }
 0x43d   : > { %2160 = vrot.lane.b32.xlu0 %v2114_v22, %s2902_s28 }
 0x440   : > { %2162 = vrot.lane.b32.xlu1 %v2115_v5, %s2902_s28 }
 0x492   : > { %v2135_v29 = vpop.permute.xlu1 %2134 }
 0x493   : > { %v2181_v32 = vsel %vm1286_vm2, %v1271_v13, %v2135_v29  ;;  %v2133_v59 = vpop.permute.xlu0 %2132 }
 0x494   : > { %v2198_v43 = vsel %vm2196_vm3, %v2181_v32, 0.0  ;;  %v2180_v49 = vsel %vm1286_vm2, %v1270_v34, %v2133_v59 }
 0x495   : > { %2214 = vst [vmem:[%s3395_s4 + $0x8] sm:$0xff] %v2198_v43  ;;  %v2197_v26 = vsel %vm2196_vm3, %v2180_v49, 0.0 }
 0x496   : > { %2213 = vst [vmem:[%s3395_s4] sm:$0xff] %v2197_v26  ;;  %v2139_v25 = vpop.permute.xlu1 %2138 }
 0x497   : > { %v2183_v13 = vsel %vm1286_vm2, %v1273_v0, %v2139_v25 }
 0x498   : > { %v2200_v28 = vsel %vm2196_vm3, %v2183_v13, 0.0 }
 0x499   : > { %2216 = vst [vmem:[%s3395_s4 + $0x18] sm:$0xff] %v2200_v28 }
 0x49a   : > { %v2137_v34 = vpop.permute.xlu1 %2136 }
 0x49b   : > { %v2182_v60 = vsel %vm1286_vm2, %v1272_v40, %v2137_v34  ;;  %v2141_v56 = vpop.permute.xlu0 %2140 }
 0x49c   : > { %v2199_v27 = vsel %vm2196_vm3, %v2182_v60, 0.0  ;;  %v2184_v3 = vsel %vm1286_vm2, %v1274_v46, %v2141_v56 }
 0x49d   : > { %2215 = vst [vmem:[%s3395_s4 + $0x10] sm:$0xff] %v2199_v27  ;;  %v2201_v37 = vsel %vm2196_vm3, %v2184_v3, 0.0 }
 0x49e   : > { %2217 = vst [vmem:[%s3395_s4 + $0x20] sm:$0xff] %v2201_v37  ;;  %v2143_v0 = vpop.permute.xlu1 %2142 }
 0x49f   : > { %v2185_v38 = vsel %vm1286_vm2, %v1275_v31, %v2143_v0  ;;  %v2145_v9 = vpop.permute.xlu0 %2144 }
 0x4a0   : > { %v2202_v40 = vsel %vm2196_vm3, %v2185_v38, 0.0  ;;  %v2186_v44 = vsel %vm1286_vm2, %v1276_v55, %v2145_v9 }
 0x4a1   : > { %2218 = vst [vmem:[%s3395_s4 + $0x28] sm:$0xff] %v2202_v40  ;;  %v2203_v46 = vsel %vm2196_vm3, %v2186_v44, 0.0 }
 0x4a2   : > { %2219 = vst [vmem:[%s3395_s4 + $0x30] sm:$0xff] %v2203_v46  ;;  %v2147_v41 = vpop.permute.xlu1 %2146 }
 0x4a3   : > { %v2187_v15 = vsel %vm1286_vm2, %v1277_v54, %v2147_v41  ;;  %v2149_v7 = vpop.permute.xlu0 %2148 }
 0x4a4   : > { %v2204_v31 = vsel %vm2196_vm3, %v2187_v15, 0.0  ;;  %v2188_v52 = vsel %vm1286_vm2, %v1278_v36, %v2149_v7 }
 0x4a5   : > { %2220 = vst [vmem:[%s3395_s4 + $0x38] sm:$0xff] %v2204_v31  ;;  %v2205_v55 = vsel %vm2196_vm3, %v2188_v52, 0.0 }
 0x4a6   : > { %2221 = vst [vmem:[%s3395_s4 + $0x40] sm:$0xff] %v2205_v55  ;;  %v2151_v23 = vpop.permute.xlu1 %2150 }
 0x4a7   : > { %v2189_v21 = vsel %vm1286_vm2, %v1279_v58, %v2151_v23  ;;  %v2153_v1 = vpop.permute.xlu0 %2152 }
 0x4a8   : > { %v2206_v54 = vsel %vm2196_vm3, %v2189_v21, 0.0  ;;  %v2190_v33 = vsel %vm1286_vm2, %v1280_v63, %v2153_v1 }
 0x4a9   : > { %2222 = vst [vmem:[%s3395_s4 + $0x48] sm:$0xff] %v2206_v54  ;;  %v2207_v36 = vsel %vm2196_vm3, %v2190_v33, 0.0 }
 0x4aa   : > { %2223 = vst [vmem:[%s3395_s4 + $0x50] sm:$0xff] %v2207_v36  ;;  %v2155_v45 = vpop.permute.xlu1 %2154 }
 0x4ab   : > { %v2191_v57 = vsel %vm1286_vm2, %v1281_v62, %v2155_v45  ;;  %v2157_v58 = vpop.permute.xlu0 %2156 }
 0x4ac   : > { %v2208_v50 = vsel %vm2196_vm3, %v2191_v57, 0.0  ;;  %v2192_v61 = vsel %vm1286_vm2, %v1282_v11, %v2157_v58 }
 0x4ad   : > { %2224 = vst [vmem:[%s3395_s4 + $0x58] sm:$0xff] %v2208_v50  ;;  %v2209_v63 = vsel %vm2196_vm3, %v2192_v61, 0.0 }
 0x4ae   : > { %2225 = vst [vmem:[%s3395_s4 + $0x60] sm:$0xff] %v2209_v63  ;;  %v2159_v39 = vpop.permute.xlu1 %2158 }
 0x4af   : > { %v2193_v6 = vsel %vm1286_vm2, %v1283_v8, %v2159_v39  ;;  %v2161_v62 = vpop.permute.xlu0 %2160 }
 0x4b0   : > { %v2210_v12 = vsel %vm2196_vm3, %v2193_v6, 0.0  ;;  %v2194_v10 = vsel %vm1286_vm2, %v1284_v51, %v2161_v62 }
 0x4b1   : > { %2226 = vst [vmem:[%s3395_s4 + $0x68] sm:$0xff] %v2210_v12  ;;  %v2211_v11 = vsel %vm2196_vm3, %v2194_v10, 0.0 }
 0x4b2   : > { %2227 = vst [vmem:[%s3395_s4 + $0x70] sm:$0xff] %v2211_v11  ;;  %v2163_v19 = vpop.permute.xlu1 %2162 }
 0x4b3   : > { %v2195_v4 = vsel %vm1286_vm2, %v1285_v18, %v2163_v19 }
 0x4b4   : > { %v2212_v8 = vsel %vm2196_vm3, %v2195_v4, 0.0 }
 0x4b5   : > { %2228 = vst [vmem:[%s3395_s4 + $0x78] sm:$0xff] %v2212_v8 }
 0x4b6   : > { %2851 = shalt.err (!%p2848_p3)
}
 0x4b7   : > { %s2852_s20 = scalar_lea.hbm %s3470_s9, 2048  ;;  %s2856_s26 = scalar_lea.hbm %s3525_s3, 4096 }
 0x4b8   : > { %p2853_p4 = scmp.ne.s32.totalorder %s3470_s9, %s2852_s20  ;;  %p2857_p9 = scmp.lt.u32.totalorder %s3470_s9, %s3525_s3 }
 0x4b9   : > { %p2858_p10 = scmp.lt.u32.totalorder %s2856_s26, %s2852_s20  ;;  %p2860_p12 = scmp.lt.u32.totalorder %s2852_s20, %s3470_s9 }
 0x4ba   : > { %p2854_p7 = pnand %p2853_p4, %p2964_p5 }
 0x4bb   : > { %p2859_p11 = por %p2858_p10, %p2857_p9 }
 0x4bc   : > { %p2855_p8 = pneg %p2854_p7 }
 0x4bd   : > { %p2861_p13 = por %p2860_p12, %p2859_p11 }
 0x4bf   : > { %p2862_p0 = pnand %p2861_p13, %p2855_p8 }
 0x4c1   : > { %2865 = shalt.err (!%p2862_p0)
}
 0x4c2   : > { %s2904_s29 = smov 128   ;;  %s2905_s30 = smov 8  }
 0x4c3   : > { %2748 = dma.vmem_to_hbm [thread:$0]  (%p2964_p5), %s3472_s6, 2048, %s3470_s9, %s3481_s16, %s2904_s29, %s2904_s29, %s2905_s30  }
 0x4c4 PF: > { %p2754_p1 = scmp.ge.s32.totalorder %s2900_s15, 2  ;;  %s2259_s4 = sand.u32 1, %s2888_s12  }
 0x4c5   : > { %s2260_s5 = scalar_lea.sflag [#allocation3], %s2259_s4 }
 0x4c6   : > { %p2751_p2 = pnand %p2754_p1, %p2968_p6 }
 0x4c8   : > { %2883 = dma.done.wait (!%p2751_p2), %s2260_s5, 2048  }
 0x4c9   : > { %2885 = vsyncadd (!%p2751_p2), %s2260_s5, 4294965248  ;;  %p13_p3 = scmp.ge.s32.totalorder %s2951_s18, 4   ;;  %s3528_s12 = smov %s2892_s13 }
 0x4ca   : > { %s3529_s13 = smov %s2896_s14  ;;  %s3530_s14 = smov %s2962_s21 }
 0x4cb   : > { %s3531_s15 = smov %s2951_s18  ;;  %15 = sbr.rel (!%p13_p3) target bundleno = 3 (0x3), region = 70 }
 0x4d2   :  { %2265 = vsyncpa [#allocation3], 1 }
 0x4d3   :  { %2267 = vsyncpa [#allocation3 + $0x1], 1 }

</bundles_post_ra>
